<compile_context>
chip_gen: v7x
topology: tpu7x:2x2x1
jax: 0.10.0
libtpu: 0.0.40
codegen_flags: <defaults>
</compile_context>

<pallas_src>
import math

import jax
import jax.numpy as jnp
from jax.experimental import pallas as pl
from jax.experimental.pallas import tpu as pltpu  # noqa: F401  (not needed: grid=(), whole arrays in VMEM)

# ---------------- small config (shapes consistent with the module) -----------
B          = 2
C_LOW      = 16                 # channels of x (low level feature -> K, V)
C_HIGH     = 8                  # channels of x_high_level (-> Q)
EMB        = 32                 # emb_dim
NUM_HEADS  = 8
PATCH      = (4, 4)             # patch_size
FEATURE    = (16, 16)           # feature_size (== spatial size of x)
HH = WH    = 8                  # spatial size of x_high_level
HQ = WQ    = 4                  # conv(k=3,s=2,p=1) output spatial -> 4x4 queries
BN_EPS     = 1e-3

PH, PW   = PATCH
POOL     = PH * PW                       # 16
NP_H     = FEATURE[0] // PH              # 4
NP_W     = FEATURE[1] // PW              # 4
P        = NP_H * NP_W                   # 16 key/value patches
QLEN     = HQ * WQ                       # 16 query positions
DH       = EMB // NUM_HEADS              # 4   per-head q/k dim
DV       = (C_LOW // NUM_HEADS) * POOL   # 32  per-head value dim
CPOOL    = C_LOW * POOL                  # 256 patch slab width
KQ_RAW   = C_HIGH * 9                    # 72  im2col width of the query conv
KQ_PAD   = 128                           # lane-aligned contraction for the query matmul


# ---------------- fused Pallas kernel (grid=(), everything in VMEM) ----------
def _csfa_cross_attention_kernel(patches_ref, cols_ref, wk_ref, wq_ref,
                                 maskk_ref, maskv_ref, sumk_ref, o_ref):
    """Single invocation; both batch elements resident in VMEM.

    patches_ref : (B*P, CPOOL)      bf16  raw patch slab (keys AND values)
    cols_ref    : (B*QLEN, KQ_PAD)  bf16  im2col(x_high) + ones col (BN bias) + zero pad
    wk_ref      : (CPOOL, EMB)      bf16  AvgPool + key Linear + 1/sqrt(dh) folded
    wq_ref      : (KQ_PAD, EMB)     bf16  conv-as-matmul, BN scale folded, bias row
    maskk_ref   : (NH*P, EMB)       f32   block mask: row-head == emb-head
    maskv_ref   : (NH*P, NH*DV)     bf16  block mask: row-head == value-col-head
    sumk_ref    : (NH*P, NH*P)      bf16  block-ones: per-head softmax denominator
    o_ref       : (B*QLEN, NH*DV)   bf16  lane-dense output slab (256 lanes)
    """
    patches = patches_ref[...]                                        # (32, 256) bf16

    # ---- projections for BOTH batch elements at once (sublane-stacked) ------
    key = jnp.dot(patches, wk_ref[...],
                  preferred_element_type=jnp.float32)                 # (B*P, EMB) f32
    q = jnp.dot(cols_ref[...], wq_ref[...],
                preferred_element_type=jnp.float32)                   # (B*QLEN, EMB) f32
    q = q * jax.nn.sigmoid(q)                                         # SiLU (BN folded into wq)

    maskk = maskk_ref[...]                                            # (128, 32) f32
    maskv = maskv_ref[...]                                            # (128, 256) bf16
    sumk = sumk_ref[...]                                              # (128, 128) bf16

    # ---- attention: tiny batch unrolled in Python; row slices are tile-aligned
    for bi in range(B):
        key_b = key[bi * P:(bi + 1) * P, :]                           # (16, 32) f32
        q_b = q[bi * QLEN:(bi + 1) * QLEN, :].astype(jnp.bfloat16)    # (16, 32) bf16
        patches_b = patches[bi * P:(bi + 1) * P, :]                   # (16, 256) bf16

        # Block-diagonal K (NH*P, EMB): row block h = key_b masked to head-h emb cols.
        # Built in f32 (VPU), cast to bf16 once right before the MXU.
        k_bd = (jnp.concatenate([key_b] * NUM_HEADS, axis=0) * maskk
                ).astype(jnp.bfloat16)                                # (128, 32)
        # Lane-packed scores for all heads: (QLEN, NH*P) = (16, 128).
        s = jax.lax.dot_general(q_b, k_bd, (((1,), (1,)), ((), ())),
                                preferred_element_type=jnp.float32)

        # Segmented softmax over each 16-lane head block.  No max-subtraction:
        # 1/sqrt(dh) is folded into wk and activations are bounded here.
        # TODO(synk): restore a segmented max-subtraction for unbounded inputs.
        e = jnp.exp(s)                                                # (16, 128) f32
        denom = jnp.dot(e.astype(jnp.bfloat16), sumk,
                        preferred_element_type=jnp.float32)           # per-head sums, broadcast
        probs = (e * pl.reciprocal(denom, approx=True)).astype(jnp.bfloat16)

        # Block-diagonal V (NH*P, NH*DV); ONE MXU pass -> lane-dense (16, 256).
        v_bd = jnp.concatenate([patches_b] * NUM_HEADS, axis=0) * maskv
        out_b = jnp.dot(probs, v_bd, preferred_element_type=jnp.float32)
        o_ref[bi * QLEN:(bi + 1) * QLEN, :] = out_b.astype(o_ref.dtype)


# ---------------- parameters (deterministic, synthetic) ----------------------
def init_params(key):
    k1, k2, k3, k4 = jax.random.split(key, 4)
    return {
        # nn.Linear(c_low, emb, bias=False): weight (emb, c_low)
        "w_key": 0.1 * jax.random.normal(k1, (EMB, C_LOW), jnp.float32),
        # Conv2d(c_high, emb, 3, 2, 1, bias=False): weight (emb, c_high, 3, 3)
        "w_conv": 0.1 * jax.random.normal(k2, (EMB, C_HIGH, 3, 3), jnp.float32),
        # BatchNorm2d(emb)
        "bn_gamma": 1.0 + 0.1 * jax.random.normal(k3, (EMB,), jnp.float32),
        "bn_beta": 0.1 * jax.random.normal(k4, (EMB,), jnp.float32),
        "bn_mean": jnp.zeros((EMB,), jnp.float32),
        "bn_var": jnp.ones((EMB,), jnp.float32),
    }


def _block_mask(rows, cols, row_block, col_block, dtype):
    r = jnp.arange(rows)[:, None] // row_block
    c = jnp.arange(cols)[None, :] // col_block
    return (r == c).astype(dtype)


# ---------------- forward (Pallas path) ---------------------------------------
def cross_attention_forward(x, x_high, params):
    b, c, h, w = x.shape

    # ---- patch slab: (b*P, c*ph*pw), last axis ordered (channel, ph, pw). ----
    # Serves as BOTH the value (per-head lane blocks) and the key input
    # (avg-pool folded into the key weight matrix below).
    patches = x.reshape(b, c, NP_H, PH, NP_W, PW).transpose(0, 2, 4, 1, 3, 5)
    patches = patches.reshape(b * P, CPOOL)

    # ---- im2col for the 3x3 stride-2 pad-1 query conv ------------------------
    xh = jnp.pad(x_high, ((0, 0), (0, 0), (1, 1), (1, 1)))
    cols = [xh[:, :, kh:kh + 2 * HQ:2, kw:kw + 2 * WQ:2]
            for kh in range(3) for kw in range(3)]                   # 9 x (b, c_high, HQ, WQ)
    cols = jnp.stack(cols, axis=2)                                   # (b, c_high, 9, HQ, WQ)
    cols = cols.transpose(0, 3, 4, 1, 2).reshape(b * QLEN, KQ_RAW)
    # Pad to a lane-aligned K=128 contraction; the extra ones-column carries
    # the folded BatchNorm bias.
    cols = jnp.concatenate(
        [cols, jnp.ones((b * QLEN, 1), cols.dtype),
         jnp.zeros((b * QLEN, KQ_PAD - KQ_RAW - 1), cols.dtype)], axis=-1)

    # ---- fold AvgPool (1/pool), key Linear and 1/sqrt(dh) into one matrix ----
    wk = jnp.repeat(params["w_key"].T, POOL, axis=0) * (1.0 / (POOL * math.sqrt(DH)))
    # ---- fold BatchNorm into the conv-as-matmul query weights ----------------
    bn_scale = params["bn_gamma"] / jnp.sqrt(params["bn_var"] + BN_EPS)
    bn_bias = params["bn_beta"] - params["bn_mean"] * bn_scale
    wq = params["w_conv"].reshape(EMB, KQ_RAW).T * bn_scale[None, :]
    wq = jnp.concatenate(
        [wq, bn_bias[None, :], jnp.zeros((KQ_PAD - KQ_RAW - 1, EMB), wq.dtype)],
        axis=0)                                                      # (128, 32)

    # ---- constant block masks (trace-time) ------------------------------------
    maskk = _block_mask(NUM_HEADS * P, EMB, P, DH, jnp.float32)              # (128, 32)
    maskv = _block_mask(NUM_HEADS * P, NUM_HEADS * DV, P, DV, jnp.bfloat16)  # (128, 256)
    sumk = _block_mask(NUM_HEADS * P, NUM_HEADS * P, P, P, jnp.bfloat16)     # (128, 128)

    y = pl.pallas_call(
        _csfa_cross_attention_kernel,
        out_shape=jax.ShapeDtypeStruct((b * QLEN, NUM_HEADS * DV), jnp.bfloat16),
    )(patches.astype(jnp.bfloat16), cols.astype(jnp.bfloat16),
      wk.astype(jnp.bfloat16), wq.astype(jnp.bfloat16), maskk, maskv, sumk)

    # ---- reassemble: rows are (b, oh, ow); the 256 lanes are (c, ph, pw) ------
    y = y.astype(jnp.float32)
    y = y.reshape(b, HQ, WQ, c, PH, PW).transpose(0, 3, 1, 4, 2, 5)
    return y.reshape(b, c, HQ * PH, WQ * PW)


# ---------------- pure-JAX reference (mirrors the PyTorch module) ------------
def reference_forward(x, x_high, params):
    b, c, h, w = x.shape
    n_h, n_w = h // PH, w // PW
    nh = NUM_HEADS

    # value
    v = x.reshape(b * nh, c // nh, n_h, PH, n_w, PW).transpose(0, 2, 4, 1, 3, 5)
    v = v.reshape(b * nh, P, (c // nh) * PH * PW)
    # key = Linear(AvgPool(x))
    xp = x.reshape(b, c, n_h, PH, n_w, PW).mean(axis=(3, 5)).reshape(b, c, P)
    xp = xp.transpose(0, 2, 1)                                       # (b, P, c)
    key = jnp.einsum("bpc,ec->bpe", xp, params["w_key"])
    key = key.reshape(b, P, nh, DH).transpose(0, 2, 1, 3).reshape(b * nh, P, DH)
    # query = SiLU(BN(Conv3x3 s2 p1(x_high)))
    qf = jax.lax.conv_general_dilated(x_high, params["w_conv"], (2, 2),
                                      ((1, 1), (1, 1)),
                                      dimension_numbers=("NCHW", "OIHW", "NCHW"))
    scale = params["bn_gamma"] / jnp.sqrt(params["bn_var"] + BN_EPS)
    bias = params["bn_beta"] - params["bn_mean"] * scale
    qf = qf * scale[None, :, None, None] + bias[None, :, None, None]
    qf = qf * jax.nn.sigmoid(qf)
    qlen = qf.shape[2] * qf.shape[3]
    query = qf.reshape(b, EMB, qlen).transpose(0, 2, 1)
    query = query.reshape(b, qlen, nh, DH).transpose(0, 2, 1, 3).reshape(b * nh, qlen, DH)
    # attention
    s = jnp.einsum("bqd,bpd->bqp", query, key) / math.sqrt(DH)
    wgt = jax.nn.softmax(s, axis=-1)
    y = jnp.einsum("bqp,bpv->bqv", wgt, v)                           # (b*nh, qlen, dv)
    # reassemble
    patch_x = FEATURE[0] // PH
    patch_y = FEATURE[1] // PW
    y = y.reshape(b, nh, qlen, c // nh, PH, PW).transpose(0, 2, 1, 3, 4, 5)
    y = y.reshape(b, patch_y, patch_x, c, PH, PW).transpose(0, 3, 1, 4, 2, 5)
    return y.reshape(b, c, patch_y * PH, patch_x * PW)


# ---------------- main --------------------------------------------------------
if __name__ == "__main__":
    root = jax.random.PRNGKey(0)
    kx, kxh, kp = jax.random.split(root, 3)
    x = jax.random.normal(kx, (B, C_LOW, FEATURE[0], FEATURE[1]), jnp.float32)
    x_high = jax.random.normal(kxh, (B, C_HIGH, HH, WH), jnp.float32)
    params = init_params(kp)

    out = jax.jit(cross_attention_forward)(x, x_high, params)
    jax.block_until_ready(out)

    ref = reference_forward(x, x_high, params)
    assert out.shape == (B, C_LOW, FEATURE[0], FEATURE[1]), out.shape
    assert bool(jnp.all(jnp.isfinite(out)))
    max_err = float(jnp.max(jnp.abs(out - ref)))
    assert max_err < 5e-2, f"max abs error vs reference: {max_err}"
    print("KERNEL_OK")
</pallas_src>

<mosaic_0001>
module attributes {stable_mosaic.version = 11 : i64} {
  func.func @_csfa_cross_attention_kernel(%arg0: memref<32x256xbf16, #tpu.memory_space<vmem>>, %arg1: memref<32x128xbf16, #tpu.memory_space<vmem>>, %arg2: memref<256x32xbf16, #tpu.memory_space<vmem>>, %arg3: memref<128x32xbf16, #tpu.memory_space<vmem>>, %arg4: memref<128x32xf32, #tpu.memory_space<vmem>>, %arg5: memref<128x256xbf16, #tpu.memory_space<vmem>>, %arg6: memref<128x128xbf16, #tpu.memory_space<vmem>>, %arg7: memref<32x256xbf16, #tpu.memory_space<vmem>>) attributes {dimension_semantics = [], scalar_prefetch = 0 : i64, scratch_operands = 0 : i64, tpu.core_type = #tpu.core_type<tc>} {
    %c0 = arith.constant 0 : index
    %c0_0 = arith.constant 0 : index
    %0 = vector.load %arg0[%c0, %c0_0] : memref<32x256xbf16, #tpu.memory_space<vmem>>, vector<32x256xbf16>
    %c0_1 = arith.constant 0 : index
    %c0_2 = arith.constant 0 : index
    %1 = vector.load %arg2[%c0_1, %c0_2] : memref<256x32xbf16, #tpu.memory_space<vmem>>, vector<256x32xbf16>
    %cst = arith.constant dense<0.000000e+00> : vector<32x32xf32>
    %2 = tpu.matmul %0, %1, %cst {dimension_numbers = #tpu.dot_dimension_numbers<[1], [0], [0], [1], [0, 0, 1, 1], [], []>} : vector<32x256xbf16>, vector<256x32xbf16>, vector<32x32xf32> -> vector<32x32xf32>
    %c0_3 = arith.constant 0 : index
    %c0_4 = arith.constant 0 : index
    %3 = vector.load %arg1[%c0_3, %c0_4] : memref<32x128xbf16, #tpu.memory_space<vmem>>, vector<32x128xbf16>
    %c0_5 = arith.constant 0 : index
    %c0_6 = arith.constant 0 : index
    %4 = vector.load %arg3[%c0_5, %c0_6] : memref<128x32xbf16, #tpu.memory_space<vmem>>, vector<128x32xbf16>
    %cst_7 = arith.constant dense<0.000000e+00> : vector<32x32xf32>
    %5 = tpu.matmul %3, %4, %cst_7 {dimension_numbers = #tpu.dot_dimension_numbers<[1], [0], [0], [1], [0, 0, 1, 1], [], []>} : vector<32x128xbf16>, vector<128x32xbf16>, vector<32x32xf32> -> vector<32x32xf32>
    %6 = arith.negf %5 : vector<32x32xf32>
    %7 = math.exp %6 : vector<32x32xf32>
    %cst_8 = arith.constant 1.000000e+00 : f32
    %8 = vector.broadcast %cst_8 : f32 to vector<32x32xf32>
    %9 = arith.addf %8, %7 : vector<32x32xf32>
    %10 = arith.divf %8, %9 : vector<32x32xf32>
    %11 = arith.mulf %5, %10 : vector<32x32xf32>
    %c0_9 = arith.constant 0 : index
    %c0_10 = arith.constant 0 : index
    %12 = vector.load %arg4[%c0_9, %c0_10] : memref<128x32xf32, #tpu.memory_space<vmem>>, vector<128x32xf32>
    %c0_11 = arith.constant 0 : index
    %c0_12 = arith.constant 0 : index
    %13 = vector.load %arg5[%c0_11, %c0_12] : memref<128x256xbf16, #tpu.memory_space<vmem>>, vector<128x256xbf16>
    %c0_13 = arith.constant 0 : index
    %c0_14 = arith.constant 0 : index
    %14 = vector.load %arg6[%c0_13, %c0_14] : memref<128x128xbf16, #tpu.memory_space<vmem>>, vector<128x128xbf16>
    %15 = vector.extract_strided_slice %2 {offsets = [0, 0], sizes = [16, 32], strides = [1, 1]} : vector<32x32xf32> to vector<16x32xf32>
    %16 = vector.extract_strided_slice %11 {offsets = [0, 0], sizes = [16, 32], strides = [1, 1]} : vector<32x32xf32> to vector<16x32xf32>
    %17 = arith.truncf %16 : vector<16x32xf32> to vector<16x32xbf16>
    %18 = vector.extract_strided_slice %0 {offsets = [0, 0], sizes = [16, 256], strides = [1, 1]} : vector<32x256xbf16> to vector<16x256xbf16>
    %19 = tpu.concatenate %15, %15, %15, %15, %15, %15, %15, %15 in 0 : vector<16x32xf32>, vector<16x32xf32>, vector<16x32xf32>, vector<16x32xf32>, vector<16x32xf32>, vector<16x32xf32>, vector<16x32xf32>, vector<16x32xf32> -> vector<128x32xf32>
    %20 = arith.mulf %19, %12 : vector<128x32xf32>
    %21 = arith.truncf %20 : vector<128x32xf32> to vector<128x32xbf16>
    %cst_15 = arith.constant dense<0.000000e+00> : vector<16x128xf32>
    %22 = tpu.matmul %17, %21, %cst_15 {dimension_numbers = #tpu.dot_dimension_numbers<[1], [1], [0], [0], [0, 0, 1, 0], [], []>} : vector<16x32xbf16>, vector<128x32xbf16>, vector<16x128xf32> -> vector<16x128xf32>
    %23 = math.exp %22 : vector<16x128xf32>
    %24 = arith.truncf %23 : vector<16x128xf32> to vector<16x128xbf16>
    %cst_16 = arith.constant dense<0.000000e+00> : vector<16x128xf32>
    %25 = tpu.matmul %24, %14, %cst_16 {dimension_numbers = #tpu.dot_dimension_numbers<[1], [0], [0], [1], [0, 0, 1, 1], [], []>} : vector<16x128xbf16>, vector<128x128xbf16>, vector<16x128xf32> -> vector<16x128xf32>
    %26 = tpu.reciprocal %25 {approx = true} : vector<16x128xf32> -> vector<16x128xf32>
    %27 = arith.mulf %23, %26 : vector<16x128xf32>
    %28 = arith.truncf %27 : vector<16x128xf32> to vector<16x128xbf16>
    %29 = tpu.concatenate %18, %18, %18, %18, %18, %18, %18, %18 in 0 : vector<16x256xbf16>, vector<16x256xbf16>, vector<16x256xbf16>, vector<16x256xbf16>, vector<16x256xbf16>, vector<16x256xbf16>, vector<16x256xbf16>, vector<16x256xbf16> -> vector<128x256xbf16>
    %30 = arith.mulf %29, %13 : vector<128x256xbf16>
    %cst_17 = arith.constant dense<0.000000e+00> : vector<16x256xf32>
    %31 = tpu.matmul %28, %30, %cst_17 {dimension_numbers = #tpu.dot_dimension_numbers<[1], [0], [0], [1], [0, 0, 1, 1], [], []>} : vector<16x128xbf16>, vector<128x256xbf16>, vector<16x256xf32> -> vector<16x256xf32>
    %32 = arith.truncf %31 : vector<16x256xf32> to vector<16x256xbf16>
    %c0_18 = arith.constant 0 : index
    %c0_19 = arith.constant 0 : index
    %33 = vector.load %arg7[%c0_18, %c0_19] : memref<32x256xbf16, #tpu.memory_space<vmem>>, vector<16x256xbf16>
    tpu.vector_store %arg7[%c0_18, %c0_19], %32 {strides = array<i32>} : memref<32x256xbf16, #tpu.memory_space<vmem>>, vector<16x256xbf16>,
    %34 = vector.extract_strided_slice %2 {offsets = [16, 0], sizes = [16, 32], strides = [1, 1]} : vector<32x32xf32> to vector<16x32xf32>
    %35 = vector.extract_strided_slice %11 {offsets = [16, 0], sizes = [16, 32], strides = [1, 1]} : vector<32x32xf32> to vector<16x32xf32>
    %36 = arith.truncf %35 : vector<16x32xf32> to vector<16x32xbf16>
    %37 = vector.extract_strided_slice %0 {offsets = [16, 0], sizes = [16, 256], strides = [1, 1]} : vector<32x256xbf16> to vector<16x256xbf16>
    %38 = tpu.concatenate %34, %34, %34, %34, %34, %34, %34, %34 in 0 : vector<16x32xf32>, vector<16x32xf32>, vector<16x32xf32>, vector<16x32xf32>, vector<16x32xf32>, vector<16x32xf32>, vector<16x32xf32>, vector<16x32xf32> -> vector<128x32xf32>
    %39 = arith.mulf %38, %12 : vector<128x32xf32>
    %40 = arith.truncf %39 : vector<128x32xf32> to vector<128x32xbf16>
    %cst_20 = arith.constant dense<0.000000e+00> : vector<16x128xf32>
    %41 = tpu.matmul %36, %40, %cst_20 {dimension_numbers = #tpu.dot_dimension_numbers<[1], [1], [0], [0], [0, 0, 1, 0], [], []>} : vector<16x32xbf16>, vector<128x32xbf16>, vector<16x128xf32> -> vector<16x128xf32>
    %42 = math.exp %41 : vector<16x128xf32>
    %43 = arith.truncf %42 : vector<16x128xf32> to vector<16x128xbf16>
    %cst_21 = arith.constant dense<0.000000e+00> : vector<16x128xf32>
    %44 = tpu.matmul %43, %14, %cst_21 {dimension_numbers = #tpu.dot_dimension_numbers<[1], [0], [0], [1], [0, 0, 1, 1], [], []>} : vector<16x128xbf16>, vector<128x128xbf16>, vector<16x128xf32> -> vector<16x128xf32>
    %45 = tpu.reciprocal %44 {approx = true} : vector<16x128xf32> -> vector<16x128xf32>
    %46 = arith.mulf %42, %45 : vector<16x128xf32>
    %47 = arith.truncf %46 : vector<16x128xf32> to vector<16x128xbf16>
    %48 = tpu.concatenate %37, %37, %37, %37, %37, %37, %37, %37 in 0 : vector<16x256xbf16>, vector<16x256xbf16>, vector<16x256xbf16>, vector<16x256xbf16>, vector<16x256xbf16>, vector<16x256xbf16>, vector<16x256xbf16>, vector<16x256xbf16> -> vector<128x256xbf16>
    %49 = arith.mulf %48, %13 : vector<128x256xbf16>
    %cst_22 = arith.constant dense<0.000000e+00> : vector<16x256xf32>
    %50 = tpu.matmul %47, %49, %cst_22 {dimension_numbers = #tpu.dot_dimension_numbers<[1], [0], [0], [1], [0, 0, 1, 1], [], []>} : vector<16x128xbf16>, vector<128x256xbf16>, vector<16x256xf32> -> vector<16x256xf32>
    %51 = arith.truncf %50 : vector<16x256xf32> to vector<16x256xbf16>
    %c16 = arith.constant 16 : index
    %c0_23 = arith.constant 0 : index
    %52 = vector.load %arg7[%c16, %c0_23] : memref<32x256xbf16, #tpu.memory_space<vmem>>, vector<16x256xbf16>
    tpu.vector_store %arg7[%c16, %c0_23], %51 {strides = array<i32>} : memref<32x256xbf16, #tpu.memory_space<vmem>>, vector<16x256xbf16>,
    return
  }
}

</mosaic_0001>

<bundles_post_ra>
// kernel: cross_attention_forward.1
= control target key start
LH: loop header
LB: loop body
LE: loop exit
PB: predicated region body
PF: predicated region fallthrough
CT: control target
= control target key end

     0   :  { %v1341_v30 = vmov 0.0   ;;  %vm1342_vm0 = vmmov 0   ;;  %vm458_vm1 = vcmask 261120   ;;  %s1995_s2 = inlined_call_operand.vmem [shape: bf16[256,32], index: 2, kind: input, shape index: {}]   ;;  %s1996_s3 = inlined_call_operand.vmem [shape: bf16[128,32], index: 3, kind: input, shape index: {}]   ;;  %s1997_s0 = inlined_call_operand.vmem [shape: bf16[32,256], index: 0, kind: input, shape index: {}]   ;;  %s1998_s1 = inlined_call_operand.vmem [shape: bf16[32,128], index: 1, kind: input, shape index: {}]   ;;  %s1999_s4 = inlined_call_operand.vmem [shape: f32[128,32], index: 4, kind: input, shape index: {}]   ;;  %s2000_s6 = inlined_call_operand.vmem [shape: bf16[128,128], index: 6, kind: input, shape index: {}]   ;;  %s2001_s5 = inlined_call_operand.vmem [shape: bf16[128,256], index: 5, kind: input, shape index: {}]   ;;  %s2002_s7 = inlined_call_operand.vmem [shape: bf16[32,256], index: 7, kind: output, shape index: {}]  }
   0x1   :  { %v1245_v0 = vld [vmem:[%s1995_s2 + $0x40] sm:$0xff]   ;;  %v1247_v2 = vld [vmem:[%s1995_s2 + $0x48] sm:$0xff]   ;;  %v1249_v4 = vld [vmem:[%s1995_s2 + $0x50] sm:$0xff]  }
   0x2   :  { %v1246_v1 = vld [vmem:[%s1995_s2] sm:$0xff]   ;;  %1068 = vmatprep.subr.bf16.mxu0 %v1245_v0  ;;  %v1248_v3 = vld [vmem:[%s1995_s2 + $0x8] sm:$0xff]   ;;  %v1250_v6 = vld [vmem:[%s1995_s2 + $0x10] sm:$0xff]  }
   0x3   :  { %1069 = vmatpush3.bf16.msra.mxu0 %v1246_v1  ;;  %v1251_v5 = vld [vmem:[%s1996_s3] sm:$0xff]   ;;  %v1252_v7 = vld [vmem:[%s1995_s2 + $0x58] sm:$0xff]   ;;  %v1254_v8 = vld [vmem:[%s1996_s3 + $0x8] sm:$0xff]  }
   0x4   :  { %1070 = vmatprep.subr.bf16.mxu0 %v1247_v2  ;;  %1142 = vmatprep.subr.bf16.mxu1 %v1251_v5  ;;  %v1253_v9 = vld [vmem:[%s1995_s2 + $0x18] sm:$0xff]   ;;  %v1255_v10 = vld [vmem:[%s1995_s2 + $0x60] sm:$0xff]   ;;  %v1257_v11 = vld [vmem:[%s1996_s3 + $0x10] sm:$0xff]  }
   0x5   :  { %1143 = vmatpush3.bf16.msra.mxu1 %v1251_v5  ;;  %v1256_v12 = vld [vmem:[%s1995_s2 + $0x20] sm:$0xff]   ;;  %v1260_v13 = vld [vmem:[%s1996_s3 + $0x18] sm:$0xff]   ;;  %v1258_v14 = vld [vmem:[%s1995_s2 + $0x68] sm:$0xff]  }
   0x6   :  { %1144 = vmatprep.subr.bf16.mxu1 %v1254_v8  ;;  %v1263_v15 = vld [vmem:[%s1996_s3 + $0x20] sm:$0xff]   ;;  %v1259_v16 = vld [vmem:[%s1995_s2 + $0x28] sm:$0xff]   ;;  %v1261_v17 = vld [vmem:[%s1995_s2 + $0x70] sm:$0xff]  }
   0x7   :  { %1071 = vmatpush3.bf16.msra.mxu0 %v1248_v3  ;;  %v1441_v18 = vld [vmem:[%s1997_s0 + $0x4] ss:$8 sps:$4 sm:$0xff]   ;;  %v1262_v20 = vld [vmem:[%s1995_s2 + $0x30] sm:$0xff]   ;;  %v1264_v21 = vld [vmem:[%s1995_s2 + $0x78] sm:$0xff]  }
   0x8   :  { %1072 = vmatprep.subr.bf16.mxu0 %v1249_v4  ;;  %v1268_v19 = vld [vmem:[%s1996_s3 + $0x28] sm:$0xff]   ;;  %211 = vmatprep.mubr.bf16.mxu0 %v1441_v18  ;;  %v1270_v22 = vld [vmem:[%s1996_s3 + $0x30] sm:$0xff]   ;;  %v1272_v23 = vld [vmem:[%s1998_s1] sm:$0xff]  }
   0x9   :  { %1145 = vmatpush3.bf16.msra.mxu1 %v1254_v8  ;;  %v1265_v24 = vld [vmem:[%s1995_s2 + $0x38] sm:$0xff]   ;;  %1158 = vmatprep.mubr.bf16.mxu1 %v1272_v23  ;;  %v1465_v25 = vld [vmem:[%s1997_s0] ss:$8 sps:$4 sm:$0xff]   ;;  %v1500_v34 = vld [vmem:[%s1999_s4 + $0x10] sm:$0xff] }
   0xa   :  { %1146 = vmatprep.subr.bf16.mxu1 %v1257_v11  ;;  %v1271_v26 = vld [vmem:[%s1996_s3 + $0x38] sm:$0xff]   ;;  %v1273_v28 = vld [vmem:[%s1998_s1 + $0x8] sm:$0xff]   ;;  %v1495_v32 = vld [vmem:[%s1999_s4] sm:$0xff] }
   0xb   :  { %1073 = vmatpush3.bf16.msra.mxu0 %v1250_v6  ;;  %v1473_v27 = vld [vmem:[%s1997_s0 + $0x14] ss:$8 sps:$4 sm:$0xff]   ;;  %v1483_v29 = vld [vmem:[%s1997_s0 + $0x10] ss:$8 sps:$4 sm:$0xff]   ;;  %v1505_v35 = vld [vmem:[%s1999_s4 + $0x20] sm:$0xff] }
   0xc   :  { %1074 = vmatprep.subr.bf16.mxu0 %v1252_v7  ;;  %v1510_v36 = vld [vmem:[%s1999_s4 + $0x30] sm:$0xff]  ;;  %v1515_v39 = vld [vmem:[%s1999_s4 + $0x8] sm:$0xff]  ;;  %v1520_v40 = vld [vmem:[%s1999_s4 + $0x40] sm:$0xff] }
   0xd   :  { %1147 = vmatpush3.bf16.msra.mxu1 %v1257_v11  ;;  %v1525_v41 = vld [vmem:[%s1999_s4 + $0x50] sm:$0xff]  ;;  %v1530_v43 = vld [vmem:[%s1999_s4 + $0x18] sm:$0xff]  ;;  %v1535_v44 = vld [vmem:[%s1999_s4 + $0x28] sm:$0xff] }
   0xe   :  { %1148 = vmatprep.subr.bf16.mxu1 %v1260_v13  ;;  %v1540_v45 = vld [vmem:[%s1999_s4 + $0x38] sm:$0xff]  ;;  %v1549_v49 = vld [vmem:[%s1999_s4 + $0x48] sm:$0xff]  ;;  %v397_v1 = vld [vmem:[%s1999_s4 + $0x60] sm:$0xff] }
   0xf   :  { %1075 = vmatpush3.bf16.msra.mxu0 %v1253_v9  ;;  %v1554_v50 = vld [vmem:[%s1999_s4 + $0x58] sm:$0xff]  ;;  %v1559_v51 = vld [vmem:[%s1999_s4 + $0x68] sm:$0xff] }
  0x10   :  { %1076 = vmatprep.subr.bf16.mxu0 %v1255_v10 }
  0x11   :  { %1149 = vmatpush3.bf16.msra.mxu1 %v1260_v13 }
  0x12   :  { %1150 = vmatprep.subr.bf16.mxu1 %v1263_v15 }
  0x13   :  { %1077 = vmatpush3.bf16.msra.mxu0 %v1256_v12 }
  0x14   :  { %1078 = vmatprep.subr.bf16.mxu0 %v1258_v14 }
  0x15   :  { %1151 = vmatpush3.bf16.msra.mxu1 %v1263_v15 }
  0x16   :  { %1152 = vmatprep.subr.bf16.mxu1 %v1268_v19 }
  0x17   :  { %1079 = vmatpush3.bf16.msra.mxu0 %v1259_v16 }
  0x18   :  { %1080 = vmatprep.subr.bf16.mxu0 %v1261_v17 }
  0x19   :  { %1153 = vmatpush3.bf16.msra.mxu1 %v1268_v19  ;;  %v399_v19 = vld [vmem:[%s1999_s4 + $0x70] sm:$0xff] }
  0x1a   :  { %1154 = vmatprep.subr.bf16.mxu1 %v1270_v22 }
  0x1b   :  { %1081 = vmatpush3.bf16.msra.mxu0 %v1262_v20  ;;  %v400_v20 = vld [vmem:[%s1999_s4 + $0x78] sm:$0xff] }
  0x1c   :  { %1082 = vmatprep.subr.bf16.mxu0 %v1264_v21 }
  0x1d   :  { %1155 = vmatpush3.bf16.msra.mxu1 %v1270_v22 }
  0x1e   :  { %1156 = vmatprep.subr.bf16.mxu1 %v1271_v26 }
  0x1f   :  { %1083 = vmatpush3.bf16.msra.mxu0 %v1265_v24 }
  0x20   :  { %1162 = vmatprep.subr.bf16.mxu0 %v1341_v30 }
  0x21   :  { %1157 = vmatpush3.bf16.msra.mxu1 %v1271_v26  ;;  %v1629_v26 = vld [vmem:[%s2000_s6] sm:$0xff]  }
  0x22   :  { %212 = vmatmul.mubr.bf16.vlgmr.msra.gmra.mrb[0].mxu0 %v1465_v25  ;;  %1182 = vmatprep.subr.bf16.mxu1 %v1341_v30 }
  0x23   :  { %219 = vmatprep.mubr.bf16.mxu0 %v1473_v27 }
  0x24   :  { %1159 = vmatmul.mubr.bf16.vlgmr.msra.gmra.mrb[0].mxu1 %v1273_v28 }
  0x25   :  { %1198 = vmatprep.mubr.msk.bf16.mxu1 %vm1342_vm0, %v1341_v30  ;;  %1183 = vmatpush3.bf16.msra.mxu1 %v1629_v26 }
  0x26   :  { %1184 = vmatprep.subr.bf16.mxu1 %v1341_v30 }
  0x2a   :  { %220 = vmatmul.mubr.bf16.gmra.mrb[4].mxu0 %v1483_v29 }
  0x2b   :  { %1178 = vmatprep.mubr.msk.bf16.mxu0 %vm1342_vm0, %v1341_v30 }
  0xf5   :  { %v1084_v31 = vpop.f32.mrb[0].mxu0 }
  0xf6   :  { %v1085_v33 = vpop.f32.mrb[1].mxu0 }
  0xf7   :  { %v1086_v37 = vadd.f32 %v1085_v33, %v1084_v31  ;;  %v1087_v38 = vpop.f32.mrb[2].mxu0  ;;  %v1573_v56 = vpop.f32.mrb[0].mxu1 }
  0xf8   :  { %v1088_v42 = vpop.f32.mrb[3].mxu0  ;;  %v1032_v61 = vmul.f32 -1.442695, %v1573_v56  ;;  %v1584_v62 = vpop.f32.mrb[1].mxu1 }
  0xf9   :  { %v1089_v46 = vadd.f32 %v1088_v42, %v1087_v38  ;;  %v434_v47 = vmul.f32 %v1086_v37, %v1495_v32  ;;  %v1544_v48 = vmul.f32 %v1086_v37, %v1500_v34  ;;  %v1562_v52 = vmul.f32 %v1086_v37, %v1505_v35  ;;  %v1599_v5 = vpop.f32.mrb[2].mxu1 }
  0xfa   :  { %v1565_v53 = vmul.f32 %v1086_v37, %v1510_v36  ;;  %v1568_v54 = vmul.f32 %v1086_v37, %v1520_v40  ;;  %v1571_v55 = vmul.f32 %v1086_v37, %v1525_v41  ;;  %v1030_v4 = vmul.f32 -1.442695, %v1584_v62  ;;  %v1605_v10 = vpop.f32.mrb[3].mxu1 }
  0xfb   :  { %v435_v57 = vmul.f32 %v1089_v46, %v1515_v39  ;;  %v437_v58 = vmul.f32 %v1089_v46, %v1530_v43  ;;  %v1578_v59 = vmul.f32 %v1089_v46, %v1535_v44  ;;  %v1581_v60 = vmul.f32 %v1089_v46, %v1540_v45 }
  0xfc   :  { %v1587_v63 = vmul.f32 %v1089_v46, %v1549_v49  ;;  %v1590_v0 = vmul.f32 %v1089_v46, %v1554_v50  ;;  %v1596_v2 = vmul.f32 %v1089_v46, %v1559_v51  ;;  %1309 = vpow2.f32 %v1032_v61 }
  0xfd   :  { %v450_v3 = vpack.c.bf16 %v435_v57, %v434_v47  ;;  %v451_v6 = vpack.c.bf16 %v437_v58, %v1544_v48  ;;  %v452_v7 = vpack.c.bf16 %v1578_v59, %v1562_v52  ;;  %v1090_v8 = vpop.f32.mrb[4].mxu0  ;;  %v1033_v9 = vmul.f32 -1.442695, %v1599_v5  ;;  %v1645_v47 = vld [vmem:[%s2000_s6 + $0x8] sm:$0xff]  }
  0xfe   :  { %v453_v11 = vpack.c.bf16 %v1581_v60, %v1565_v53  ;;  %v454_v12 = vpack.c.bf16 %v1587_v63, %v1568_v54  ;;  %v1091_v13 = vpop.f32.mrb[5].mxu0  ;;  %1311 = vpow2.f32 %v1030_v4  ;;  %v1031_v15 = vmul.f32 -1.442695, %v1605_v10  ;;  %1185 = vmatpush3.bf16.msra.mxu1 %v1645_v47  ;;  %v1693_v4 = vld [vmem:[%s2000_s6 + $0x10] sm:$0xff]  }
  0xff   :  { %v463_v14 = vsel %vm458_vm1, %v450_v3, 0  ;;  %v1613_v16 = vmul.f32 %v1086_v37, %v397_v1  ;;  %v1093_v17 = vpop.f32.mrb[6].mxu0  ;;  %1313 = vpow2.f32 %v1033_v9  ;;  %v455_v22 = vpack.c.bf16 %v1590_v0, %v1571_v55  ;;  %1186 = vmatprep.subr.bf16.mxu1 %v1341_v30 }
 0x100   :  { %1163 = vmatpush3.bf16.xpose.msra.mxu0 %v463_v14  ;;  %v1094_v21 = vpop.f32.mrb[7].mxu0  ;;  %1315 = vpow2.f32 %v1031_v15  ;;  %v1092_v24 = vadd.f32 %v1091_v13, %v1090_v8  ;;  %v1631_v31 = vmul.f32 %v1086_v37, %v399_v19  ;;  %v1633_v33 = vmul.f32 %v1089_v46, %v400_v20 }
 0x101   :  { %1164 = vmatprep.subr.bf16.mxu0 %v1341_v30  ;;  %v456_v23 = vpack.c.bf16 %v1596_v2, %v1613_v16  ;;  %v1095_v28 = vadd.f32 %v1094_v21, %v1093_v17  ;;  %v472_v52 = vsel %vm458_vm1, %v453_v11, 0  ;;  %v478_v53 = vsel %vm458_vm1, %v455_v22, 0  ;;  %v1797_v16 = vld [vmem:[%s2000_s6 + $0x20] sm:$0xff]   ;;  %v1803_v22 = vld [vmem:[%s2000_s6 + $0x28] sm:$0xff]  }
 0x102   :  { %v1636_v38 = vmul.f32 %v1092_v24, %v1495_v32  ;;  %v1639_v42 = vmul.f32 %v1092_v24, %v1500_v34  ;;  %v457_v48 = vpack.c.bf16 %v1633_v33, %v1631_v31  ;;  %v1656_v32 = vmul.f32 %v1092_v24, %v1505_v35  ;;  %1187 = vmatpush3.bf16.msra.mxu1 %v1693_v4  ;;  %v1817_v31 = vld [vmem:[%s2000_s6 + $0x38] sm:$0xff]   ;;  %v1824_v33 = vld [vmem:[%s2001_s5 + $0x4] ss:$8 sps:$4 sm:$0xff]  }
 0x103   :  { %v1650_v37 = vmul.f32 %v1095_v28, %v1515_v39  ;;  %v1653_v46 = vmul.f32 %v1095_v28, %v1530_v43  ;;  %v1660_v34 = vmul.f32 %v1095_v28, %v1535_v44  ;;  %v1663_v57 = vmul.f32 %v1092_v24, %v1510_v36  ;;  %1188 = vmatprep.subr.bf16.mxu1 %v1341_v30 }
 0x104   :  { %v1666_v58 = vmul.f32 %v1095_v28, %v1540_v45  ;;  %v1669_v39 = vmul.f32 %v1092_v24, %v1520_v40  ;;  %v466_v43 = vsel %vm458_vm1, %v451_v6, 0  ;;  %v1677_v44 = vmul.f32 %v1095_v28, %v1549_v49 }
 0x105   :  { %v796_v35 = vpack.c.bf16 %v1650_v37, %v1636_v38  ;;  %v797_v61 = vpack.c.bf16 %v1653_v46, %v1639_v42  ;;  %v798_v36 = vpack.c.bf16 %v1660_v34, %v1656_v32  ;;  %v1684_v40 = vmul.f32 %v1092_v24, %v1525_v41 }
 0x106   :  { %v799_v45 = vpack.c.bf16 %v1666_v58, %v1663_v57  ;;  %v1687_v3 = vmul.f32 %v1095_v28, %v1554_v50  ;;  %v1310_v49 = vpop.eup %1309  ;;  %v800_v6 = vpack.c.bf16 %v1677_v44, %v1669_v39  ;;  %v1697_v8 = vmul.f32 %v1092_v24, %v397_v1  ;;  %v1831_v57 = vld [vmem:[%s2001_s5] ss:$8 sps:$4 sm:$0xff]   ;;  %v1836_v58 = vld [vmem:[%s2001_s5 + $0x14] ss:$8 sps:$4 sm:$0xff]   ;;  %v1843_v44 = vld [vmem:[%s2001_s5 + $0x10] ss:$8 sps:$4 sm:$0xff]  }
 0x107   :  { %v371_v9 = vadd.f32 1.0, %v1310_v49  ;;  %v1704_v15 = vmul.f32 %v1095_v28, %v1559_v51  ;;  %v1706_v17 = vmul.f32 %v1092_v24, %v399_v19  ;;  %v1714_v49 = vld [vmem:[%s2000_s6 + $0x18] sm:$0xff]   ;;  %v481_v60 = vsel %vm458_vm1, %v456_v23, 0  ;;  %v1810_v23 = vld [vmem:[%s2000_s6 + $0x30] sm:$0xff]  }
 0x108   :  { %1165 = vmatpush3.bf16.xpose.msra.mxu0 %v466_v43  ;;  %v1312_v41 = vpop.eup %1311  ;;  %v1708_v43 = vmul.f32 %v1095_v28, %v400_v20  ;;  %v469_v20 = vsel %vm458_vm1, %v452_v7, 0  ;;  %1189 = vmatpush3.bf16.msra.mxu1 %v1714_v49  ;;  %v484_v54 = vsel %vm458_vm1, %v457_v48, 0  ;;  %v808_v55 = vsel %vm458_vm1, %v796_v35, 0 }
 0x109   :  { %1166 = vmatprep.subr.bf16.mxu0 %v1341_v30  ;;  %v1314_v13 = vpop.eup %1313  ;;  %v369_v14 = vadd.f32 1.0, %v1312_v41  ;;  %1317 = vrcp.f32 %v371_v9  ;;  %v802_v51 = vpack.c.bf16 %v1704_v15, %v1697_v8  ;;  %1190 = vmatprep.subr.bf16.mxu1 %v1341_v30  ;;  %v814_v63 = vsel %vm458_vm1, %v798_v36, 0 }
 0x10a   :  { %v1316_v21 = vpop.eup %1315  ;;  %v372_v1 = vadd.f32 1.0, %v1314_v13  ;;  %v803_v19 = vpack.c.bf16 %v1708_v43, %v1706_v17  ;;  %v817_v0 = vsel %vm458_vm1, %v799_v45, 0  ;;  %v820_v2 = vsel %vm458_vm1, %v800_v6, 0  ;;  %v1857_v6 = vld [vmem:[%s2001_s5 + $0x20] ss:$8 sps:$4 sm:$0xff]  }
 0x10b   :  { %1319 = vrcp.f32 %v369_v14  ;;  %v370_v50 = vadd.f32 1.0, %v1316_v21  ;;  %v826_v11 = vsel %vm458_vm1, %v802_v51, 0  ;;  %v707_v38 = vmul.bf16 %v1824_v33, %v1441_v18  ;;  %v1864_v17 = vld [vmem:[%s2001_s5 + $0x34] ss:$8 sps:$4 sm:$0xff]  }
 0x10c   :  { %1321 = vrcp.f32 %v372_v1  ;;  %1191 = vmatpush3.bf16.msra.mxu1 %v1797_v16  ;;  %v709_v45 = vmul.bf16 %v1836_v58, %v1441_v18  ;;  %v710_v21 = vmul.bf16 %v1857_v6, %v1465_v25  ;;  %v1871_v1 = vld [vmem:[%s2001_s5 + $0x30] ss:$8 sps:$4 sm:$0xff]   ;;  %v713_v43 = vmul.bf16 %v1864_v17, %v1441_v18 }
 0x10d   :  { %1323 = vrcp.f32 %v370_v50  ;;  %1192 = vmatprep.subr.bf16.mxu1 %v1341_v30  ;;  %v712_v51 = vmul.bf16 %v1871_v1, %v1465_v25 }
 0x110   :  { %1167 = vmatpush3.bf16.xpose.msra.mxu0 %v469_v20  ;;  %1193 = vmatpush3.bf16.msra.mxu1 %v1803_v22 }
 0x111   :  { %1168 = vmatprep.subr.bf16.mxu0 %v1341_v30  ;;  %1194 = vmatprep.subr.bf16.mxu1 %v1341_v30 }
 0x113   :  { %v1318_v24 = vpop.eup %1317 }
 0x114   :  { %v383_v8 = vmul.f32 %v1318_v24, %v1573_v56  ;;  %v475_v56 = vsel %vm458_vm1, %v454_v12, 0  ;;  %v829_v12 = vsel %vm458_vm1, %v803_v19, 0  ;;  %1195 = vmatpush3.bf16.msra.mxu1 %v1810_v23 }
 0x115   :  { %v1320_v28 = vpop.eup %1319  ;;  %1196 = vmatprep.subr.bf16.mxu1 %v1341_v30 }
 0x116   :  { %v1322_v41 = vpop.eup %1321  ;;  %v381_v9 = vmul.f32 %v1320_v28, %v1584_v62  ;;  %v811_v62 = vsel %vm458_vm1, %v797_v61, 0  ;;  %v706_v61 = vmul.bf16 %v1831_v57, %v1465_v25 }
 0x117   :  { %v1324_v59 = vpop.eup %1323  ;;  %v384_v7 = vmul.f32 %v1322_v41, %v1599_v5  ;;  %v2003_v5 = vpack.c.bf16 %v1687_v3, %v1684_v40  ;;  %v1850_v40 = vld [vmem:[%s2001_s5 + $0x24] ss:$8 sps:$4 sm:$0xff]   ;;  %v708_v3 = vmul.bf16 %v1843_v44, %v1465_v25 }
 0x118   :  { %1169 = vmatpush3.bf16.xpose.msra.mxu0 %v472_v52  ;;  %v382_v50 = vmul.f32 %v1324_v59, %v1605_v10  ;;  %1197 = vmatpush3.bf16.msra.mxu1 %v1817_v31  ;;  %v711_v15 = vmul.bf16 %v1850_v40, %v1441_v18  ;;  %v1885_v41 = vld [vmem:[%s2001_s5 + $0x44] ss:$8 sps:$4 sm:$0xff]   ;;  %v1894_v59 = vld [vmem:[%s2001_s5 + $0x50] ss:$8 sps:$4 sm:$0xff]  }
 0x119   :  { %1170 = vmatprep.subr.bf16.mxu0 %v1341_v30  ;;  %v779_v13 = vpack.c.bf16 %v384_v7, %v383_v8  ;;  %v823_v10 = vsel %vm458_vm1, %v2003_v5, 0  ;;  %722 = vmatprep.subr.bf16.mxu1 %v707_v38  ;;  %v1880_v8 = vld [vmem:[%s2001_s5 + $0x40] ss:$8 sps:$4 sm:$0xff]   ;;  %v1899_v7 = vld [vmem:[%s2001_s5 + $0x54] ss:$8 sps:$4 sm:$0xff]  }
 0x11a   :  { %v433_v14 = vpack.c.bf16 %v382_v50, %v381_v9  ;;  %v715_v9 = vmul.bf16 %v1885_v41, %v1441_v18  ;;  %v714_v52 = vmul.bf16 %v1880_v8, %v1465_v25  ;;  %v1904_v50 = vld [vmem:[%s2001_s5 + $0x64] ss:$8 sps:$4 sm:$0xff]  }
 0x120   :  { %1171 = vmatpush3.bf16.xpose.msra.mxu0 %v475_v56  ;;  %v1913_v56 = vld [vmem:[%s2001_s5 + $0x60] ss:$8 sps:$4 sm:$0xff]  }
 0x121   :  { %1172 = vmatprep.subr.bf16.mxu0 %v1341_v30 }
 0x128   :  { %1173 = vmatpush3.bf16.xpose.msra.mxu0 %v478_v53  ;;  %v1343_v53 = vmov 0  }
 0x129   :  { %1174 = vmatprep.subr.bf16.mxu0 %v1341_v30 }
 0x130   :  { %1175 = vmatpush3.bf16.xpose.msra.mxu0 %v481_v60  ;;  %v719_v60 = vmul.bf16 %v1904_v50, %v1441_v18 }
 0x131   :  { %1176 = vmatprep.subr.bf16.mxu0 %v1341_v30 }
 0x138   :  { %1177 = vmatpush3.bf16.xpose.msra.mxu0 %v484_v54  ;;  %v1920_v54 = vld [vmem:[%s2001_s5 + $0x74] ss:$8 sps:$4 sm:$0xff]  }
 0x139   :  { %1202 = vmatprep.subr.bf16.mxu0 %v1341_v30 }
 0x13f   :  { %1179 = vmatmul.mubr.msk.bf16.vlgmr.msra.gmra.mrb[8].mxu0 %vm458_vm1, %v433_v14  ;;  %v716_v14 = vmul.bf16 %v1894_v59, %v1465_v25 }
 0x140   :  { %1203 = vmatpush3.bf16.xpose.msra.mxu0 %v808_v55  ;;  %1218 = vmatprep.mubr.msk.bf16.mxu0 %vm1342_vm0, %v1341_v30  ;;  %v718_v55 = vmul.bf16 %v1913_v56, %v1465_v25 }
 0x141   :  { %1204 = vmatprep.subr.bf16.mxu0 %v1341_v30 }
 0x148   :  { %1205 = vmatpush3.bf16.xpose.msra.mxu0 %v811_v62  ;;  %v1927_v62 = vld [vmem:[%s2001_s5 + $0x70] ss:$8 sps:$4 sm:$0xff]  }
 0x149   :  { %1206 = vmatprep.subr.bf16.mxu0 %v1341_v30 }
 0x150   :  { %1207 = vmatpush3.bf16.xpose.msra.mxu0 %v814_v63  ;;  %v721_v63 = vmul.bf16 %v1920_v54, %v1441_v18 }
 0x151   :  { %1208 = vmatprep.subr.bf16.mxu0 %v1341_v30 }
 0x158   :  { %1209 = vmatpush3.bf16.xpose.msra.mxu0 %v817_v0  ;;  %v720_v0 = vmul.bf16 %v1927_v62, %v1465_v25 }
 0x159   :  { %1210 = vmatprep.subr.bf16.mxu0 %v1341_v30 }
 0x160   :  { %1211 = vmatpush3.bf16.xpose.msra.mxu0 %v820_v2 }
 0x161   :  { %1212 = vmatprep.subr.bf16.mxu0 %v1341_v30 }
 0x168   :  { %1213 = vmatpush3.bf16.xpose.msra.mxu0 %v823_v10 }
 0x169   :  { %1214 = vmatprep.subr.bf16.mxu0 %v1341_v30 }
 0x170   :  { %1215 = vmatpush3.bf16.xpose.msra.mxu0 %v826_v11 }
 0x171   :  { %1216 = vmatprep.subr.bf16.mxu0 %v1341_v30 }
 0x178   :  { %1217 = vmatpush3.bf16.xpose.msra.mxu0 %v829_v12 }
 0x17f   :  { %1219 = vmatmul.mubr.msk.bf16.vlgmr.msra.gmra.mrb[12].mxu0 %vm458_vm1, %v779_v13  ;;  %v717_v13 = vmul.bf16 %v1899_v7, %v1441_v18 }
 0x212   :  { %v520_v42 = vpop.f32.mrb[8].mxu0 }
 0x213   :  { %v527_v48 = vmul.f32 1.442695, %v520_v42  ;;  %v1180_v37 = vpop.f32.mrb[9].mxu0 }
 0x214   :  { %v523_v46 = vpop.f32.mrb[10].mxu0 }
 0x215   :  { %v529_v32 = vmul.f32 1.442695, %v523_v46  ;;  %v1181_v34 = vpop.f32.mrb[11].mxu0  ;;  %1325 = vpow2.f32 %v527_v48  ;;  %v929_v46 = vmul.bf16 %v1871_v1, %v1483_v29 }
 0x216   :  { %v931_v34 = vmul.bf16 %v1880_v8, %v1483_v29 }
 0x217   :  { %1327 = vpow2.f32 %v529_v32  ;;  %v932_v32 = vmul.bf16 %v1885_v41, %v1473_v27 }
 0x21f   :  { %v1326_v39 = vpop.eup %1325 }
 0x221   :  { %v1328_v35 = vpop.eup %1327 }
 0x222   :  { %v531_v36 = vpack.c.bf16 %v1328_v35, %v1326_v39 }
 0x224   :  { %1199 = vmatmul.mubr.bf16.vlgmr.msra.gmra.mrb[4].mxu1 %v531_v36 }
 0x225   :  { %723 = vmatpush1.bf16.msra.mxu1 %v706_v61  ;;  %754 = vmatprep.mubr.bf16.mxu1 %v1343_v53  ;;  %v938_v61 = vmul.bf16 %v1920_v54, %v1473_v27 }
 0x226   :  { %724 = vmatprep.subr.bf16.mxu1 %v709_v45 }
 0x229   :  { %725 = vmatpush1.bf16.msra.mxu1 %v708_v3 }
 0x22a   :  { %726 = vmatprep.subr.bf16.mxu1 %v711_v15 }
 0x22d   :  { %727 = vmatpush1.bf16.msra.mxu1 %v710_v21 }
 0x22e   :  { %728 = vmatprep.subr.bf16.mxu1 %v713_v43 }
 0x231   :  { %729 = vmatpush1.bf16.msra.mxu1 %v712_v51 }
 0x232   :  { %730 = vmatprep.subr.bf16.mxu1 %v715_v9 }
 0x235   :  { %731 = vmatpush1.bf16.msra.mxu1 %v714_v52 }
 0x236   :  { %732 = vmatprep.subr.bf16.mxu1 %v717_v13 }
 0x239   :  { %733 = vmatpush1.bf16.msra.mxu1 %v716_v14 }
 0x23a   :  { %734 = vmatprep.subr.bf16.mxu1 %v719_v60 }
 0x23d   :  { %735 = vmatpush1.bf16.msra.mxu1 %v718_v55 }
 0x23e   :  { %736 = vmatprep.subr.bf16.mxu1 %v721_v63 }
 0x241   :  { %737 = vmatpush1.bf16.msra.mxu1 %v720_v0 }
 0x242   :  { %1222 = vmatprep.subr.bf16.mxu1 %v1341_v30 }
 0x252   :  { %v865_v19 = vpop.f32.mrb[12].mxu0 }
 0x253   :  { %v1220_v20 = vpop.f32.mrb[13].mxu0  ;;  %v872_v25 = vmul.f32 1.442695, %v865_v19 }
 0x254   :  { %v868_v24 = vpop.f32.mrb[14].mxu0 }
 0x255   :  { %v1221_v28 = vpop.f32.mrb[15].mxu0  ;;  %v874_v18 = vmul.f32 1.442695, %v868_v24 }
 0x2f7   :  { %v614_v2 = vpop.f32.mrb[4].mxu1 }
 0x2f8   :  { %1329 = vrcp.f32 %v614_v2  ;;  %v1200_v5 = vpop.f32.mrb[5].mxu1 }
 0x2f9   :  { %v617_v10 = vpop.f32.mrb[6].mxu1 }
 0x2fa   :  { %1331 = vrcp.f32 %v617_v10  ;;  %v1201_v11 = vpop.f32.mrb[7].mxu1 }
 0x2fb   :  { %1333 = vpow2.f32 %v874_v18 }
 0x2fc   :  { %1335 = vpow2.f32 %v872_v25 }
 0x302   :  { %v1330_v12 = vpop.eup %1329 }
 0x303   :  { %v623_v42 = vmul.f32 %v1330_v12, %v1326_v39  ;;  %v936_v39 = vmul.bf16 %v1904_v50, %v1473_v27 }
 0x304   :  { %v1332_v38 = vpop.eup %1331 }
 0x305   :  { %v624_v48 = vmul.f32 %v1332_v38, %v1328_v35  ;;  %v935_v35 = vmul.bf16 %v1913_v56, %v1483_v29 }
 0x307   :  { %v625_v37 = vpack.c.bf16 %v624_v48, %v623_v42 }
 0x309   :  { %755 = vmatmul.mubr.bf16.vlgmr.msra.gmra.mrb[8].mxu1 %v625_v37 }
 0x30a   :  { %1223 = vmatpush3.bf16.msra.mxu1 %v1629_v26  ;;  %1238 = vmatprep.mubr.msk.bf16.mxu1 %vm1342_vm0, %v1341_v30  ;;  %v1334_v26 = vpop.eup %1333 }
 0x30b   :  { %1224 = vmatprep.subr.bf16.mxu1 %v1341_v30 }
 0x30e   :  { %1225 = vmatpush3.bf16.msra.mxu1 %v1645_v47  ;;  %v1336_v47 = vpop.eup %1335 }
 0x30f   :  { %1226 = vmatprep.subr.bf16.mxu1 %v1341_v30 }
 0x312   :  { %1227 = vmatpush3.bf16.msra.mxu1 %v1693_v4  ;;  %v876_v4 = vpack.c.bf16 %v1334_v26, %v1336_v47 }
 0x313   :  { %1228 = vmatprep.subr.bf16.mxu1 %v1341_v30 }
 0x316   :  { %1229 = vmatpush3.bf16.msra.mxu1 %v1714_v49  ;;  %v924_v49 = vmul.bf16 %v1824_v33, %v1473_v27  ;;  %v930_v33 = vmul.bf16 %v1864_v17, %v1473_v27 }
 0x317   :  { %1230 = vmatprep.subr.bf16.mxu1 %v1341_v30 }
 0x31a   :  { %1231 = vmatpush3.bf16.msra.mxu1 %v1797_v16  ;;  %v923_v16 = vmul.bf16 %v1831_v57, %v1483_v29  ;;  %v934_v57 = vmul.bf16 %v1899_v7, %v1473_v27 }
 0x31b   :  { %1232 = vmatprep.subr.bf16.mxu1 %v1341_v30 }
 0x31e   :  { %1233 = vmatpush3.bf16.msra.mxu1 %v1803_v22  ;;  %v926_v22 = vmul.bf16 %v1836_v58, %v1473_v27  ;;  %v933_v58 = vmul.bf16 %v1894_v59, %v1483_v29 }
 0x31f   :  { %1234 = vmatprep.subr.bf16.mxu1 %v1341_v30 }
 0x322   :  { %1235 = vmatpush3.bf16.msra.mxu1 %v1810_v23  ;;  %v928_v23 = vmul.bf16 %v1850_v40, %v1473_v27 }
 0x323   :  { %1236 = vmatprep.subr.bf16.mxu1 %v1341_v30  ;;  %v925_v30 = vmul.bf16 %v1843_v44, %v1483_v29  ;;  %v937_v44 = vmul.bf16 %v1927_v62, %v1483_v29 }
 0x326   :  { %1237 = vmatpush3.bf16.msra.mxu1 %v1817_v31  ;;  %v927_v31 = vmul.bf16 %v1857_v6, %v1483_v29 }
 0x327   :  { %939 = vmatprep.subr.bf16.mxu1 %v924_v49 }
 0x329   :  { %1239 = vmatmul.mubr.bf16.vlgmr.msra.gmra.mrb[12].mxu1 %v876_v4 }
 0x32a   :  { %971 = vmatprep.mubr.bf16.mxu1 %v1343_v53  ;;  %940 = vmatpush1.bf16.msra.mxu1 %v923_v16 }
 0x32b   :  { %941 = vmatprep.subr.bf16.mxu1 %v926_v22 }
 0x32e   :  { %942 = vmatpush1.bf16.msra.mxu1 %v925_v30 }
 0x32f   :  { %943 = vmatprep.subr.bf16.mxu1 %v928_v23 }
 0x332   :  { %944 = vmatpush1.bf16.msra.mxu1 %v927_v31 }
 0x333   :  { %945 = vmatprep.subr.bf16.mxu1 %v930_v33 }
 0x336   :  { %946 = vmatpush1.bf16.msra.mxu1 %v929_v46 }
 0x337   :  { %947 = vmatprep.subr.bf16.mxu1 %v932_v32 }
 0x33a   :  { %948 = vmatpush1.bf16.msra.mxu1 %v931_v34 }
 0x33b   :  { %949 = vmatprep.subr.bf16.mxu1 %v934_v57 }
 0x33e   :  { %950 = vmatpush1.bf16.msra.mxu1 %v933_v58 }
 0x33f   :  { %951 = vmatprep.subr.bf16.mxu1 %v936_v39 }
 0x342   :  { %952 = vmatpush1.bf16.msra.mxu1 %v935_v35 }
 0x343   :  { %953 = vmatprep.subr.bf16.mxu1 %v938_v61 }
 0x346   :  { %954 = vmatpush1.bf16.msra.mxu1 %v937_v44 }
 0x3dc   :  { %v756_v36 = vpop.f32.mrb[8].mxu1 }
 0x3dd   :  { %v758_v45 = vpop.f32.mrb[9].mxu1 }
 0x3de   :  { %v1064_v40 = vpack.c.bf16 %v758_v45, %v756_v36  ;;  %v760_v3 = vpop.f32.mrb[10].mxu1 }
 0x3df   :  { %v762_v6 = vpop.f32.mrb[11].mxu1 }
 0x3e0   :  { %777 = vst [vmem:[%s2002_s7] sm:$0xff] %v1064_v40  ;;  %v1065_v15 = vpack.c.bf16 %v762_v6, %v760_v3 }
 0x3e2   :  { %778 = vst [vmem:[%s2002_s7 + $0x8] sm:$0xff] %v1065_v15 }
 0x3fc   :  { %v911_v27 = vpop.f32.mrb[12].mxu1 }
 0x3fd   :  { %1337 = vrcp.f32 %v911_v27  ;;  %v1240_v17 = vpop.f32.mrb[13].mxu1 }
 0x3fe   :  { %v914_v29 = vpop.f32.mrb[14].mxu1 }
 0x3ff   :  { %1339 = vrcp.f32 %v914_v29  ;;  %v1241_v21 = vpop.f32.mrb[15].mxu1 }
 0x407   :  { %v1338_v1 = vpop.eup %1337 }
 0x408   :  { %v920_v51 = vmul.f32 %v1338_v1, %v1336_v47 }
 0x409   :  { %v1340_v43 = vpop.eup %1339 }
 0x40a   :  { %v921_v19 = vmul.f32 %v1340_v43, %v1334_v26 }
 0x40c   :  { %v922_v20 = vpack.c.bf16 %v921_v19, %v920_v51 }
 0x40e   :  { %972 = vmatmul.mubr.bf16.vlgmr.msra.gmra.mrb[16].mxu1 %v922_v20 }
 0x4e1   :  { %v973_v24 = vpop.f32.mrb[16].mxu1 }
 0x4e2   :  { %v975_v28 = vpop.f32.mrb[17].mxu1 }
 0x4e3   :  { %v1066_v8 = vpack.c.bf16 %v975_v28, %v973_v24  ;;  %v977_v41 = vpop.f32.mrb[18].mxu1 }
 0x4e4   :  { %v979_v9 = vpop.f32.mrb[19].mxu1 }
 0x4e5   :  { %994 = vst [vmem:[%s2002_s7 + $0x10] sm:$0xff] %v1066_v8  ;;  %v1067_v52 = vpack.c.bf16 %v979_v9, %v977_v41 }
 0x4e7   :  { %995 = vst [vmem:[%s2002_s7 + $0x18] sm:$0xff] %v1067_v52 }

</bundles_post_ra>
